<compile_context>
chip_gen: v7x
topology: tpu7x:2x2x1
jax: 0.10.0
libtpu: 0.0.40
codegen_flags: <defaults>
</compile_context>

<pallas_src>
import functools

import jax
import jax.numpy as jnp
from jax.experimental import pallas as pl
from jax.experimental.pallas import tpu as pltpu

_LANE = 128
_MIB = 1 << 20
# Per-step block target for the fused path: small enough that 2x-input +
# 2x-output double buffers fit every generation's default scoped VMEM (v5e's
# 16 MiB included), big enough to amortize per-grid-step overhead.
_FUSED_BLOCK_TARGET_BYTES = 2 * _MIB
# Spatial tile target for the two-phase (large feature map) fallback.
_HW_TILE_TARGET_BYTES = 2 * _MIB


def _round_up(x, m):
    return (x + m - 1) // m * m


def _vmem_limit_bytes(block_bytes_per_step):
    # 2x double-buffered input + 2x output + headroom for weights/temps.
    # Clamp so the limit is legal on every generation (v7x: 64 MiB physical).
    need = 4 * block_bytes_per_step + (4 << 20)
    return int(min(48 * _MIB, max(16 * _MIB, need)))


# ----------------------------------------------------------------------------
# Fused single-pass kernel: (Bt, C, HWp) block -> squeeze, excite, scale.
# ----------------------------------------------------------------------------
def _se_fused_kernel(x_ref, w1_ref, b1_ref, w2_ref, b2_ref, o_ref, *, inv_hw):
    # Squeeze: per-(image, channel) spatial mean, accumulated in f32 without
    # materializing a full f32 copy of the block.
    mean = jnp.sum(x_ref[...], axis=-1, dtype=jnp.float32) * inv_hw      # (Bt, C)

    # Excite: two tiny dense layers on the mean matrix (MXU), f32 math.
    h = jnp.dot(mean, w1_ref[...], preferred_element_type=jnp.float32) + b1_ref[...]
    h = jnp.maximum(h, 0.0)                                              # ReLU
    s = jnp.dot(h, w2_ref[...], preferred_element_type=jnp.float32) + b2_ref[...]
    gate = jax.nn.sigmoid(s)                                             # (Bt, C)

    # Scale in the input dtype (bf16-native VPU on v6e/v7x); lane-dense store.
    o_ref[...] = x_ref[...] * gate[:, :, None].astype(o_ref.dtype)


# ----------------------------------------------------------------------------
# Two-phase fallback, pass 1: spatially tiled gate computation.
#   grid = (N, num_hw_tiles); tile axis is an accumulation ("arbitrary") axis.
# ----------------------------------------------------------------------------
def _se_gate_kernel(x_ref, w1_ref, b1_ref, w2_ref, b2_ref, g_ref, acc_ref, *,
                    inv_hw):
    t = pl.program_id(1)

    @pl.when(t == 0)
    def _():
        acc_ref[...] = jnp.zeros_like(acc_ref)

    acc_ref[...] += jnp.sum(x_ref[...], axis=-1, dtype=jnp.float32)      # (1, C)

    @pl.when(t == pl.num_programs(1) - 1)
    def _():
        mean = acc_ref[...] * inv_hw                                     # (1, C)
        h = jnp.dot(mean, w1_ref[...], preferred_element_type=jnp.float32) + b1_ref[...]
        h = jnp.maximum(h, 0.0)
        s = jnp.dot(h, w2_ref[...], preferred_element_type=jnp.float32) + b2_ref[...]
        g_ref[...] = jax.nn.sigmoid(s)[:, :, None]                       # (1, C, 1)


# ----------------------------------------------------------------------------
# Two-phase fallback, pass 2: tiled elementwise scale (fully parallel grid).
# ----------------------------------------------------------------------------
def _se_scale_kernel(x_ref, g_ref, o_ref):
    o_ref[...] = x_ref[...] * g_ref[...].astype(o_ref.dtype)


# ----------------------------------------------------------------------------
# Wrapper
# ----------------------------------------------------------------------------
def se_module_forward(x, fc1_w, fc1_b, fc2_w, fc2_b, *,
                      force_two_phase=False,
                      two_phase_tile_bytes=_HW_TILE_TARGET_BYTES):
    """SEModule forward.

    x     : (N, C, H, W)            (f32 or bf16)
    fc1_w : (R, C)   fc1.weight[..., 0, 0]
    fc1_b : (R,)
    fc2_w : (C, R)   fc2.weight[..., 0, 0]
    fc2_b : (C,)
    returns (N, C, H, W) in x.dtype
    """
    N, C, H, W = x.shape
    R = fc1_b.shape[0]
    HW = H * W
    itemsize = x.dtype.itemsize
    inv_hw = 1.0 / HW

    x3 = x.reshape(N, C, HW)                      # free row-major reshape (NCHW kept)

    # Weights / biases in f32, pre-transposed so the kernels need no in-kernel
    # transpose: fc1 as (C, R), fc2 as (R, C).
    w1t = jnp.asarray(fc1_w, jnp.float32).T       # (C, R)
    b1r = jnp.asarray(fc1_b, jnp.float32).reshape(1, R)
    w2t = jnp.asarray(fc2_w, jnp.float32).T       # (R, C)
    b2r = jnp.asarray(fc2_b, jnp.float32).reshape(1, C)

    img_bytes = C * _round_up(HW, _LANE) * itemsize
    use_fused = (img_bytes <= _FUSED_BLOCK_TARGET_BYTES) and not force_two_phase

    if use_fused:
        # ---------------- fused single pass: grid over batch tiles ----------
        hwp = _round_up(HW, _LANE)                # lane-dense stores
        bt = max(1, min(N, _FUSED_BLOCK_TARGET_BYTES // img_bytes))
        if N >= 2 and pl.cdiv(N, bt) < 2:         # keep >=2 steps for v7x's 2 TCs
            bt = pl.cdiv(N, 2)
        grid = (pl.cdiv(N, bt),)

        x3p = x3 if hwp == HW else jnp.pad(x3, ((0, 0), (0, 0), (0, hwp - HW)))
        block_bytes = bt * C * hwp * itemsize

        out = pl.pallas_call(
            functools.partial(_se_fused_kernel, inv_hw=inv_hw),
            out_shape=jax.ShapeDtypeStruct((N, C, hwp), x.dtype),
            grid=grid,
            in_specs=[
                pl.BlockSpec((bt, C, hwp), lambda n: (n, 0, 0)),   # batch tile
                pl.BlockSpec((C, R), lambda n: (0, 0)),            # grid-invariant
                pl.BlockSpec((1, R), lambda n: (0, 0)),
                pl.BlockSpec((R, C), lambda n: (0, 0)),
                pl.BlockSpec((1, C), lambda n: (0, 0)),
            ],
            out_specs=pl.BlockSpec((bt, C, hwp), lambda n: (n, 0, 0)),
            compiler_params=pltpu.CompilerParams(
                dimension_semantics=("parallel",),
                vmem_limit_bytes=_vmem_limit_bytes(block_bytes)),
        )(x3p, w1t, b1r, w2t, b2r)
    else:
        # ---------------- two-phase fallback for large feature maps ---------
        hw_tile = max(_LANE,
                      (two_phase_tile_bytes // (C * itemsize)) // _LANE * _LANE)
        hw_tile = min(hw_tile, _round_up(HW, _LANE))
        hwp = _round_up(HW, hw_tile)              # tiles divide the padded axis
        num_t = hwp // hw_tile

        x3p = x3 if hwp == HW else jnp.pad(x3, ((0, 0), (0, 0), (0, hwp - HW)))
        tile_bytes = C * hw_tile * itemsize

        # Pass 1: per-image gate (N, C, 1), spatial axis accumulated in VMEM.
        gate = pl.pallas_call(
            functools.partial(_se_gate_kernel, inv_hw=inv_hw),
            out_shape=jax.ShapeDtypeStruct((N, C, 1), jnp.float32),
            grid=(N, num_t),
            in_specs=[
                pl.BlockSpec((1, C, hw_tile), lambda n, t: (n, 0, t)),
                pl.BlockSpec((C, R), lambda n, t: (0, 0)),
                pl.BlockSpec((1, R), lambda n, t: (0, 0)),
                pl.BlockSpec((R, C), lambda n, t: (0, 0)),
                pl.BlockSpec((1, C), lambda n, t: (0, 0)),
            ],
            out_specs=pl.BlockSpec((1, C, 1), lambda n, t: (n, 0, 0)),
            scratch_shapes=[pltpu.VMEM((1, C), jnp.float32)],
            compiler_params=pltpu.CompilerParams(
                dimension_semantics=("parallel", "arbitrary"),
                vmem_limit_bytes=_vmem_limit_bytes(tile_bytes)),
        )(x3p, w1t, b1r, w2t, b2r)

        # Pass 2: tiled elementwise rescale (fully parallel grid).
        out = pl.pallas_call(
            _se_scale_kernel,
            out_shape=jax.ShapeDtypeStruct((N, C, hwp), x.dtype),
            grid=(N, num_t),
            in_specs=[
                pl.BlockSpec((1, C, hw_tile), lambda n, t: (n, 0, t)),
                pl.BlockSpec((1, C, 1), lambda n, t: (n, 0, 0)),
            ],
            out_specs=pl.BlockSpec((1, C, hw_tile), lambda n, t: (n, 0, t)),
            compiler_params=pltpu.CompilerParams(
                dimension_semantics=("parallel", "parallel"),
                vmem_limit_bytes=_vmem_limit_bytes(tile_bytes)),
        )(x3p, gate)

    return out[:, :, :HW].reshape(N, C, H, W)


# TODO(synk): optionally pass input_output_aliases={0: 0} from callers that
# never reuse x after the SE block (saves the output HBM allocation).


# ----------------------------------------------------------------------------
# Pure-JAX reference (mirrors the PyTorch module exactly) for verification
# ----------------------------------------------------------------------------
def se_reference(x, fc1_w, fc1_b, fc2_w, fc2_b):
    N, C, H, W = x.shape
    xm = x.astype(jnp.float32).reshape(N, C, -1).mean(-1)    # (N, C)
    h = jnp.maximum(xm @ fc1_w.T + fc1_b, 0.0)               # (N, R)
    s = h @ fc2_w.T + fc2_b                                  # (N, C)
    gate = jax.nn.sigmoid(s)[:, :, None, None]
    return x.astype(jnp.float32) * gate


# ----------------------------------------------------------------------------
if __name__ == "__main__":
    key = jax.random.PRNGKey(0)
    N, C, R, H, W = 2, 128, 32, 16, 16

    kx, k1, k2, k3, k4 = jax.random.split(key, 5)
    x = jax.random.normal(kx, (N, C, H, W), jnp.float32)

    # PyTorch Conv2d default init: uniform(-1/sqrt(fan_in), 1/sqrt(fan_in))
    bound1 = 1.0 / (C ** 0.5)
    fc1_w = jax.random.uniform(k1, (R, C), jnp.float32, -bound1, bound1)
    fc1_b = jax.random.uniform(k2, (R,), jnp.float32, -bound1, bound1)
    bound2 = 1.0 / (R ** 0.5)
    fc2_w = jax.random.uniform(k3, (C, R), jnp.float32, -bound2, bound2)
    fc2_b = jax.random.uniform(k4, (C,), jnp.float32, -bound2, bound2)

    fwd = jax.jit(se_module_forward,
                  static_argnames=("force_two_phase", "two_phase_tile_bytes"))

    # 1) fused single-pass path, f32
    out = jax.block_until_ready(fwd(x, fc1_w, fc1_b, fc2_w, fc2_b))
    ref = se_reference(x, fc1_w, fc1_b, fc2_w, fc2_b)
    assert out.shape == (N, C, H, W), out.shape
    assert bool(jnp.all(jnp.isfinite(out)))
    err = float(jnp.max(jnp.abs(out - ref)))
    assert err < 1e-4, f"fused f32 mismatch: {err}"

    # 2) bf16 activations through the fused path (means/gate stay f32)
    xb = x.astype(jnp.bfloat16)
    outb = jax.block_until_ready(fwd(xb, fc1_w, fc1_b, fc2_w, fc2_b))
    refb = se_reference(xb, fc1_w, fc1_b, fc2_w, fc2_b)
    assert outb.dtype == jnp.bfloat16
    errb = float(jnp.max(jnp.abs(outb.astype(jnp.float32) - refb)))
    assert errb < 5e-2, f"fused bf16 mismatch: {errb}"

    # 3) two-phase fallback (forced), non-128-multiple spatial size, multi-tile
    H2 = W2 = 12                                            # HW=144 -> padded
    x2 = jax.random.normal(kx, (N, C, H2, W2), jnp.float32)
    out2 = jax.block_until_ready(
        fwd(x2, fc1_w, fc1_b, fc2_w, fc2_b,
            force_two_phase=True, two_phase_tile_bytes=64 * 1024))
    ref2 = se_reference(x2, fc1_w, fc1_b, fc2_w, fc2_b)
    assert out2.shape == (N, C, H2, W2), out2.shape
    err2 = float(jnp.max(jnp.abs(out2 - ref2)))
    assert err2 < 1e-4, f"two-phase mismatch: {err2}"

    print("KERNEL_OK")
</pallas_src>

<mosaic_0001>
module attributes {stable_mosaic.version = 11 : i64} {
  func.func @_se_fused_kernel(%arg0: i32, %arg1: memref<1x128x256xf32, #tpu.memory_space<vmem>>, %arg2: memref<128x32xf32, #tpu.memory_space<vmem>>, %arg3: memref<1x32xf32, #tpu.memory_space<vmem>>, %arg4: memref<32x128xf32, #tpu.memory_space<vmem>>, %arg5: memref<1x128xf32, #tpu.memory_space<vmem>>, %arg6: memref<1x128x256xf32, #tpu.memory_space<vmem>>) attributes {dimension_semantics = [#tpu.dimension_semantics<parallel>], iteration_bounds = array<i64: 2>, scalar_prefetch = 0 : i64, scratch_operands = 0 : i64, tpu.core_type = #tpu.core_type<tc>, window_params = [{transform_indices = @transform_0, window_bounds = array<i64: 1, 128, 256>}, {pipeline_mode = #tpu.pipeline_mode<synchronous>, transform_indices = @transform_1, window_bounds = array<i64: 128, 32>}, {pipeline_mode = #tpu.pipeline_mode<synchronous>, transform_indices = @transform_2, window_bounds = array<i64: 1, 32>}, {pipeline_mode = #tpu.pipeline_mode<synchronous>, transform_indices = @transform_3, window_bounds = array<i64: 32, 128>}, {pipeline_mode = #tpu.pipeline_mode<synchronous>, transform_indices = @transform_4, window_bounds = array<i64: 1, 128>}, {transform_indices = @transform_5, window_bounds = array<i64: 1, 128, 256>}]} {
    %c0 = arith.constant 0 : index
    %c0_0 = arith.constant 0 : index
    %c0_1 = arith.constant 0 : index
    %0 = vector.load %arg1[%c0, %c0_0, %c0_1] : memref<1x128x256xf32, #tpu.memory_space<vmem>>, vector<1x128x256xf32>
    %cst = arith.constant dense<0.000000e+00> : vector<1x128xf32>
    %1 = vector.multi_reduction <add>, %0, %cst [2] : vector<1x128x256xf32> to vector<1x128xf32>
    %cst_2 = arith.constant 3.906250e-03 : f32
    %2 = vector.broadcast %cst_2 : f32 to vector<1x128xf32>
    %3 = arith.mulf %1, %2 : vector<1x128xf32>
    %c0_3 = arith.constant 0 : index
    %c0_4 = arith.constant 0 : index
    %4 = vector.load %arg2[%c0_3, %c0_4] : memref<128x32xf32, #tpu.memory_space<vmem>>, vector<128x32xf32>
    %cst_5 = arith.constant dense<0.000000e+00> : vector<1x32xf32>
    %5 = tpu.matmul %3, %4, %cst_5 {dimension_numbers = #tpu.dot_dimension_numbers<[1], [0], [0], [1], [0, 0, 1, 1], [], []>} : vector<1x128xf32>, vector<128x32xf32>, vector<1x32xf32> -> vector<1x32xf32>
    %c0_6 = arith.constant 0 : index
    %c0_7 = arith.constant 0 : index
    %6 = vector.load %arg3[%c0_6, %c0_7] : memref<1x32xf32, #tpu.memory_space<vmem>>, vector<1x32xf32>
    %7 = arith.addf %5, %6 : vector<1x32xf32>
    %cst_8 = arith.constant 0.000000e+00 : f32
    %8 = vector.broadcast %cst_8 : f32 to vector<1x32xf32>
    %9 = arith.maximumf %7, %8 : vector<1x32xf32>
    %c0_9 = arith.constant 0 : index
    %c0_10 = arith.constant 0 : index
    %10 = vector.load %arg4[%c0_9, %c0_10] : memref<32x128xf32, #tpu.memory_space<vmem>>, vector<32x128xf32>
    %cst_11 = arith.constant dense<0.000000e+00> : vector<1x128xf32>
    %11 = tpu.matmul %9, %10, %cst_11 {dimension_numbers = #tpu.dot_dimension_numbers<[1], [0], [0], [1], [0, 0, 1, 1], [], []>} : vector<1x32xf32>, vector<32x128xf32>, vector<1x128xf32> -> vector<1x128xf32>
    %c0_12 = arith.constant 0 : index
    %c0_13 = arith.constant 0 : index
    %12 = vector.load %arg5[%c0_12, %c0_13] : memref<1x128xf32, #tpu.memory_space<vmem>>, vector<1x128xf32>
    %13 = arith.addf %11, %12 : vector<1x128xf32>
    %14 = arith.negf %13 : vector<1x128xf32>
    %15 = math.exp %14 : vector<1x128xf32>
    %cst_14 = arith.constant 1.000000e+00 : f32
    %16 = vector.broadcast %cst_14 : f32 to vector<1x128xf32>
    %17 = arith.addf %16, %15 : vector<1x128xf32>
    %18 = arith.divf %16, %17 : vector<1x128xf32>
    %c0_15 = arith.constant 0 : index
    %c0_16 = arith.constant 0 : index
    %c0_17 = arith.constant 0 : index
    %19 = vector.load %arg1[%c0_15, %c0_16, %c0_17] : memref<1x128x256xf32, #tpu.memory_space<vmem>>, vector<1x128x256xf32>
    %20 = vector.shape_cast %18 : vector<1x128xf32> to vector<1x128x1xf32>
    %21 = vector.broadcast %20 : vector<1x128x1xf32> to vector<1x128x256xf32>
    %22 = arith.mulf %19, %21 : vector<1x128x256xf32>
    %c0_18 = arith.constant 0 : index
    %c0_19 = arith.constant 0 : index
    %c0_20 = arith.constant 0 : index
    %23 = vector.load %arg6[%c0_18, %c0_19, %c0_20] : memref<1x128x256xf32, #tpu.memory_space<vmem>>, vector<1x128x256xf32>
    tpu.vector_store %arg6[%c0_18, %c0_19, %c0_20], %22 {strides = array<i32>} : memref<1x128x256xf32, #tpu.memory_space<vmem>>, vector<1x128x256xf32>,
    return
  }
  func.func @transform_0(%arg0: i32) -> (i32, i32, i32) {
    %c0_i32 = arith.constant 0 : i32
    %c0_i32_0 = arith.constant 0 : i32
    %c0_i32_1 = arith.constant 0 : i32
    return %arg0, %c0_i32, %c0_i32_0 : i32, i32, i32
  }
  func.func @transform_1(%arg0: i32) -> (i32, i32) {
    %c0_i32 = arith.constant 0 : i32
    %c0_i32_0 = arith.constant 0 : i32
    %c0_i32_1 = arith.constant 0 : i32
    return %c0_i32, %c0_i32_0 : i32, i32
  }
  func.func @transform_2(%arg0: i32) -> (i32, i32) {
    %c0_i32 = arith.constant 0 : i32
    %c0_i32_0 = arith.constant 0 : i32
    %c0_i32_1 = arith.constant 0 : i32
    return %c0_i32, %c0_i32_0 : i32, i32
  }
  func.func @transform_3(%arg0: i32) -> (i32, i32) {
    %c0_i32 = arith.constant 0 : i32
    %c0_i32_0 = arith.constant 0 : i32
    %c0_i32_1 = arith.constant 0 : i32
    return %c0_i32, %c0_i32_0 : i32, i32
  }
  func.func @transform_4(%arg0: i32) -> (i32, i32) {
    %c0_i32 = arith.constant 0 : i32
    %c0_i32_0 = arith.constant 0 : i32
    %c0_i32_1 = arith.constant 0 : i32
    return %c0_i32, %c0_i32_0 : i32, i32
  }
  func.func @transform_5(%arg0: i32) -> (i32, i32, i32) {
    %c0_i32 = arith.constant 0 : i32
    %c0_i32_0 = arith.constant 0 : i32
    %c0_i32_1 = arith.constant 0 : i32
    return %arg0, %c0_i32, %c0_i32_0 : i32, i32, i32
  }
}

</mosaic_0001>

<bundles_post_ra>
// kernel: se_module_forward.1
= control target key start
LH: loop header
LB: loop body
LE: loop exit
PB: predicated region body
PF: predicated region fallthrough
CT: control target
= control target key end

     0   :  { %s977_s18 = smov 0   ;;  %s1311_s0 = inlined_call_operand.vmem [shape: f32[2,128,256], index: 0, kind: input, shape index: {}]   ;;  %s1312_s1 = inlined_call_operand.vmem [shape: f32[128,32], index: 1, kind: input, shape index: {}]   ;;  %s1313_s2 = inlined_call_operand.vmem [shape: f32[1,32], index: 2, kind: input, shape index: {}]   ;;  %s1314_s3 = inlined_call_operand.vmem [shape: f32[32,128], index: 3, kind: input, shape index: {}]   ;;  %s1315_s4 = inlined_call_operand.vmem [shape: f32[1,128], index: 4, kind: input, shape index: {}]   ;;  %s1316_s5 = inlined_call_operand.vmem [shape: f32[2,128,256], index: 5, kind: output, shape index: {}]  }
   0x1 LB: > { %s808_s19 = sadd.s32 4294967295, %s942_s18   ;;  %p812_p0 = scmp.ge.s32.totalorder %s942_s18, 1  ;;  %s942_s18 = sphi %s977_s18, %s15_s18  }
   0x2   : > { %p187_p1 = scmp.lt.s32.totalorder %s942_s18, 3 }
   0x4   : > { %p188_p2 = pnand %p812_p0, %p187_p1 }
   0x5   : > { %p215_p3 = scmp.lt.s32.totalorder (!%p188_p2), %s808_s19, 1  ;;  %v321_v34 = vld [vmem:[%s1312_s1] sm:$0xff] (!%p188_p2)  ;;  %v322_v35 = vld [vmem:[%s1312_s1 + $0x8] sm:$0xff] (!%p188_p2)  ;;  %v944_v38 = vmov (!%p188_p2), 0.0|0.0   ;;  %v323_v44 = vld [vmem:[%s1312_s1 + $0x10] sm:$0xff] (!%p188_p2)  ;;  %vm945_vm0 = vmmov (!%p188_p2), 0  }
   0x6   : > { %191 = sbr.rel (%p188_p2) target bundleno = 803 (0x323), region = 40  ;;  %v892_v36 = vpack.c.bf16 (!%p188_p2), %v322_v35, %v321_v34  ;;  %891 = vmatprep.subr.bf16.mxu0 (!%p188_p2), %v944_v38  ;;  %v324_v45 = vld [vmem:[%s1312_s1 + $0x18] sm:$0xff] (!%p188_p2)  ;;  %915 = vmatprep.subr.bf16.mxu1 (!%p188_p2), %v944_v38  ;;  %v325_v53 = vld [vmem:[%s1312_s1 + $0x20] sm:$0xff] (!%p188_p2)  ;;  %v326_v54 = vld [vmem:[%s1312_s1 + $0x28] sm:$0xff] (!%p188_p2)  ;;  %vm365_vm1 = vcmask (!%p188_p2), 130112   ;;  %vm372_vm2 = vcmask (!%p188_p2), 195712  }
   0x7   : > { %v895_v46 = vpack.c.bf16 (!%p188_p2), %v324_v45, %v323_v44  ;;  %v898_v55 = vpack.c.bf16 (!%p188_p2), %v326_v54, %v325_v53  ;;  %v327_v58 = vld [vmem:[%s1312_s1 + $0x30] sm:$0xff] (!%p188_p2)  ;;  %v328_v59 = vld [vmem:[%s1312_s1 + $0x38] sm:$0xff] (!%p188_p2)  ;;  %v329_v61 = vld [vmem:[%s1312_s1 + $0x40] sm:$0xff] (!%p188_p2)  ;;  %vm379_vm3 = vcmask (!%p188_p2), 261312   ;;  %vm386_vm4 = vcmask (!%p188_p2), 326912  }
   0x8   : > { %893 = vmatpush3.bf16.msra.mxu0 (!%p188_p2), %v892_v36  ;;  %v901_v60 = vpack.c.bf16 (!%p188_p2), %v328_v59, %v327_v58  ;;  %v330_v62 = vld [vmem:[%s1312_s1 + $0x48] sm:$0xff] (!%p188_p2)  ;;  %v537_v34 = vld [vmem:[%s1314_s3] sm:$0xff] (!%p188_p2)  ;;  %vm393_vm5 = vcmask (!%p188_p2), 392512   ;;  %vm400_vm6 = vcmask (!%p188_p2), 458112   ;;  %vm407_vm7 = vcmask (!%p188_p2), 523712  }
   0x9   : > { %894 = vmatprep.subr.bf16.mxu0 (!%p188_p2), %v944_v38  ;;  %v904_v63 = vpack.c.bf16 (!%p188_p2), %v330_v62, %v329_v61  ;;  %v538_v35 = vld [vmem:[%s1314_s3 + $0x8] sm:$0xff] (!%p188_p2)  ;;  %vm414_vm8 = vcmask (!%p188_p2), 589312   ;;  %vm421_vm9 = vcmask (!%p188_p2), 654912   ;;  %vm428_vm10 = vcmask (!%p188_p2), 720512  }
   0xa   : > { %v916_v36 = vpack.c.bf16 (!%p188_p2), %v538_v35, %v537_v34  ;;  %vm435_vm11 = vcmask (!%p188_p2), 786112   ;;  %vm442_vm12 = vcmask (!%p188_p2), 851712   ;;  %vm449_vm13 = vcmask (!%p188_p2), 917312  }
   0xb   : > { %vm456_vm14 = vcmask (!%p188_p2), 982912   ;;  %vm463_vm15 = vcmask (!%p188_p2), 1048512  }
   0xc   : > { %896 = vmatpush3.bf16.msra.mxu0 (!%p188_p2), %v895_v46  ;;  %917 = vmatpush3.bf16.msra.mxu1 (!%p188_p2), %v916_v36 }
   0xd   : > { %s1318_s19 = smov (!%p215_p3, %s808_s19), 1  ;;  %897 = vmatprep.subr.bf16.mxu0 %v944_v38  ;;  %918 = vmatprep.subr.bf16.mxu1 %v944_v38 }
   0xe   : > { %s821_s20 = sshll.u32 %s1318_s19, 8 }
   0xf   : > { %s993_s23 = scalar_lea.vmem %s1311_s0, %s821_s20  ;;  %s1242_s26 = scalar_lea.vmem %s1316_s5, %s821_s20 }
  0x10   : > { %v996_v0 = vld [vmem:[%s993_s23] sm:$0xff]  ;;  %v999_v1 = vld [vmem:[%s993_s23 + $0x8] sm:$0xff]  ;;  %v1010_v5 = vld [vmem:[%s993_s23 + $0x10] sm:$0xff]  ;;  %899 = vmatpush3.bf16.msra.mxu0 %v898_v55 }
  0x11   : > { %v1002_v2 = vld [vmem:[%s993_s23 + $0x20] sm:$0xff]  ;;  %v257_v3 = vadd.f32 %v999_v1, %v996_v0  ;;  %v1007_v4 = vld [vmem:[%s993_s23 + $0x28] sm:$0xff]  ;;  %v1013_v6 = vld [vmem:[%s993_s23 + $0x18] sm:$0xff]  ;;  %900 = vmatprep.subr.bf16.mxu0 %v944_v38 }
  0x12   : > { %v263_v7 = vadd.f32 %v1007_v4, %v1002_v2  ;;  %v1018_v8 = vld [vmem:[%s993_s23 + $0x30] sm:$0xff]  ;;  %v1021_v9 = vld [vmem:[%s993_s23 + $0x38] sm:$0xff]  ;;  %v260_v10 = vadd.f32 %v1013_v6, %v1010_v5  ;;  %v1028_v12 = vld [vmem:[%s993_s23 + $0x40] sm:$0xff] }
  0x13   : > { %258 = vadd.xlane.f32.xlu0 %v257_v3  ;;  %v266_v11 = vadd.f32 %v1021_v9, %v1018_v8  ;;  %v1031_v13 = vld [vmem:[%s993_s23 + $0x48] sm:$0xff]  ;;  %v1034_v14 = vld [vmem:[%s993_s23 + $0x50] sm:$0xff]  ;;  %v1037_v15 = vld [vmem:[%s993_s23 + $0x58] sm:$0xff] }
  0x14   : > { %264 = vadd.xlane.f32.xlu1 %v263_v7  ;;  %v269_v16 = vadd.f32 %v1031_v13, %v1028_v12  ;;  %v272_v17 = vadd.f32 %v1037_v15, %v1034_v14  ;;  %v1044_v18 = vld [vmem:[%s993_s23 + $0x60] sm:$0xff]  ;;  %v1047_v19 = vld [vmem:[%s993_s23 + $0x68] sm:$0xff]  ;;  %v1050_v20 = vld [vmem:[%s993_s23 + $0x70] sm:$0xff]  ;;  %902 = vmatpush3.bf16.msra.mxu0 %v901_v60 }
  0x15   : > { %v1053_v21 = vld [vmem:[%s993_s23 + $0x78] sm:$0xff]  ;;  %v275_v22 = vadd.f32 %v1047_v19, %v1044_v18  ;;  %v1060_v24 = vld [vmem:[%s993_s23 + $0x80] sm:$0xff]  ;;  %v1063_v25 = vld [vmem:[%s993_s23 + $0x88] sm:$0xff]  ;;  %903 = vmatprep.subr.bf16.mxu0 %v944_v38 }
  0x16   : > { %v278_v23 = vadd.f32 %v1053_v21, %v1050_v20  ;;  %v1066_v26 = vld [vmem:[%s993_s23 + $0x90] sm:$0xff]  ;;  %v1069_v27 = vld [vmem:[%s993_s23 + $0x98] sm:$0xff]  ;;  %v281_v28 = vadd.f32 %v1063_v25, %v1060_v24  ;;  %v1076_v30 = vld [vmem:[%s993_s23 + $0xa0] sm:$0xff] }
  0x17   : > { %261 = vadd.xlane.f32.xlu0 %v260_v10  ;;  %v284_v29 = vadd.f32 %v1069_v27, %v1066_v26  ;;  %v1079_v31 = vld [vmem:[%s993_s23 + $0xa8] sm:$0xff]  ;;  %v1082_v32 = vld [vmem:[%s993_s23 + $0xb0] sm:$0xff]  ;;  %v1085_v33 = vld [vmem:[%s993_s23 + $0xb8] sm:$0xff] }
  0x18   : > { %267 = vadd.xlane.f32.xlu1 %v266_v11  ;;  %v287_v37 = vadd.f32 %v1079_v31, %v1076_v30  ;;  %v290_v39 = vadd.f32 %v1085_v33, %v1082_v32  ;;  %v1099_v40 = vld [vmem:[%s993_s23 + $0xc0] sm:$0xff]  ;;  %v1102_v41 = vld [vmem:[%s993_s23 + $0xc8] sm:$0xff]  ;;  %v1105_v42 = vld [vmem:[%s993_s23 + $0xd0] sm:$0xff]  ;;  %905 = vmatpush3.bf16.msra.mxu0 %v904_v63 }
  0x19   : > { %v1108_v43 = vld [vmem:[%s993_s23 + $0xd8] sm:$0xff]  ;;  %v293_v47 = vadd.f32 %v1102_v41, %v1099_v40  ;;  %v1123_v49 = vld [vmem:[%s993_s23 + $0xe0] sm:$0xff]  ;;  %v1126_v50 = vld [vmem:[%s993_s23 + $0xe8] sm:$0xff]  ;;  %906 = vmatprep.subr.bf16.mxu0 %v944_v38 }
  0x1a   : > { %v296_v48 = vadd.f32 %v1108_v43, %v1105_v42  ;;  %v1129_v51 = vld [vmem:[%s993_s23 + $0xf0] sm:$0xff]  ;;  %v1132_v52 = vld [vmem:[%s993_s23 + $0xf8] sm:$0xff]  ;;  %v299_v56 = vadd.f32 %v1126_v50, %v1123_v49  ;;  %v333_v11 = vld [vmem:[%s1312_s1 + $0x60] sm:$0xff] }
  0x1b   : > { %270 = vadd.xlane.f32.xlu0 %v269_v16  ;;  %v302_v57 = vadd.f32 %v1132_v52, %v1129_v51  ;;  %v331_v3 = vld [vmem:[%s1312_s1 + $0x50] sm:$0xff]  ;;  %v332_v7 = vld [vmem:[%s1312_s1 + $0x58] sm:$0xff]  ;;  %v334_v16 = vld [vmem:[%s1312_s1 + $0x68] sm:$0xff] }
  0x1c   : > { %273 = vadd.xlane.f32.xlu1 %v272_v17  ;;  %v907_v10 = vpack.c.bf16 %v332_v7, %v331_v3  ;;  %v910_v17 = vpack.c.bf16 %v334_v16, %v333_v11 }
  0x1e   : > { %908 = vmatpush3.bf16.msra.mxu0 %v907_v10 }
  0x1f   : > { %276 = vadd.xlane.f32.xlu0 %v275_v22  ;;  %909 = vmatprep.subr.bf16.mxu0 %v944_v38  ;;  %v335_v22 = vld [vmem:[%s1312_s1 + $0x70] sm:$0xff] }
  0x20   : > { %279 = vadd.xlane.f32.xlu1 %v278_v23  ;;  %v336_v23 = vld [vmem:[%s1312_s1 + $0x78] sm:$0xff] }
  0x22   : > { %911 = vmatpush3.bf16.msra.mxu0 %v910_v17 }
  0x23   : > { %282 = vadd.xlane.f32.xlu0 %v281_v28  ;;  %912 = vmatprep.subr.bf16.mxu0 %v944_v38  ;;  %v913_v28 = vpack.c.bf16 %v336_v23, %v335_v22 }
  0x24   : > { %285 = vadd.xlane.f32.xlu1 %v284_v29  ;;  %v946_v29 = vmov 0.0  }
  0x25   : > { %877 = vmatprep.mubr.msk.f32.mxu0 %vm945_vm0, %v946_v29  ;;  %888 = vmatprep.mubr.msk.f32.mxu1 %vm945_vm0, %v946_v29  ;;  %vm542_vm0 = vcmask 261120  }
  0x26   : > { %914 = vmatpush3.bf16.msra.mxu0 %v913_v28 }
  0x27   : > { %288 = vadd.xlane.f32.xlu0 %v287_v37  ;;  %v354_v37 = vlaneseq }
  0x28   : > { %291 = vadd.xlane.f32.xlu1 %v290_v39 }
  0x29   : > { %v1187_v39 = vand.u32 127, %v354_v37  ;;  %v1189_v44 = vshrl.u32 %v354_v37, 7 }
  0x2b   : > { %294 = vadd.xlane.f32.xlu0 %v293_v47  ;;  %v360_v45 = vadd.s32 4294967288, %v1187_v39  ;;  %v367_v47 = vadd.s32 4294967280, %v1187_v39  ;;  %v358_v54 = vsub.s32 %v1187_v39, %v1189_v44  ;;  %v381_v38 = vadd.s32 4294967264, %v1187_v39 }
  0x2c   : > { %297 = vadd.xlane.f32.xlu1 %v296_v48  ;;  %v374_v48 = vadd.s32 4294967272, %v1187_v39  ;;  %v388_v61 = vadd.s32 4294967256, %v1187_v39  ;;  %v395_v16 = vadd.s32 4294967248, %v1187_v39  ;;  %v402_v29 = vadd.s32 4294967240, %v1187_v39 }
  0x2d   : > { %v384_v11 = vsub.s32 %v381_v38, %v1189_v44  ;;  %v416_v38 = vadd.s32 4294967224, %v1187_v39 }
  0x2e   : > { %v377_v60 = vsub.s32 %v374_v48, %v1189_v44  ;;  %v391_v28 = vsub.s32 %v388_v61, %v1189_v44  ;;  %v398_v48 = vsub.s32 %v395_v16, %v1189_v44  ;;  %v430_v16 = vadd.s32 4294967208, %v1187_v39 }
  0x2f   : > { %300 = vadd.xlane.f32.xlu0 %v299_v56  ;;  %v363_v56 = vsub.s32 %v360_v45, %v1189_v44 }
  0x30   : > { %303 = vadd.xlane.f32.xlu1 %v302_v57  ;;  %v370_v57 = vsub.s32 %v367_v47, %v1189_v44 }
  0xa0   : > { %v259_v46 = vpop.xlane.xlu0 %258 }
  0xa1   : > { %v265_v53 = vpop.xlane.xlu1 %264  ;;  %v305_v55 = vmul.f32 0.00390625, %v259_v46 }
  0xa2   : > { %v307_v58 = vmul.f32 0.00390625, %v265_v53  ;;  %v409_v53 = vadd.s32 4294967232, %v1187_v39 }
  0xa3   : > { %v359_v7 = vrot.slane %v305_v55, %v358_v54 }
  0xa4   : > { %v262_v59 = vpop.xlane.xlu0 %261  ;;  %v371_v17 = vrot.slane %v307_v58, %v370_v57 }
  0xa5   : > { %v306_v62 = vmul.f32 0.00390625, %v262_v59  ;;  %v268_v63 = vpop.xlane.xlu1 %267 }
  0xa6   : > { %v308_v3 = vmul.f32 0.00390625, %v268_v63  ;;  %v423_v63 = vadd.s32 4294967216, %v1187_v39 }
  0xa7   : > { %v364_v10 = vrot.slane %v306_v62, %v363_v56  ;;  %v405_v56 = vsub.s32 %v402_v29, %v1189_v44  ;;  %v412_v62 = vsub.s32 %v409_v53, %v1189_v44 }
  0xa8   : > { %v378_v22 = vrot.slane %v308_v3, %v377_v60  ;;  %v271_v23 = vpop.xlane.xlu0 %270 }
  0xa9   : > { %v366_v34 = vsel %vm365_vm1, %v364_v10, %v359_v7  ;;  %v309_v35 = vmul.f32 0.00390625, %v271_v23  ;;  %v274_v36 = vpop.xlane.xlu1 %273 }
  0xaa   : > { %v373_v37 = vsel %vm372_vm2, %v371_v17, %v366_v34  ;;  %v310_v45 = vmul.f32 0.00390625, %v274_v36  ;;  %v426_v34 = vsub.s32 %v423_v63, %v1189_v44 }
  0xab   : > { %v380_v46 = vsel %vm379_vm3, %v378_v22, %v373_v37  ;;  %v385_v47 = vrot.slane %v309_v35, %v384_v11  ;;  %v419_v11 = vsub.s32 %v416_v38, %v1189_v44  ;;  %v437_v35 = vadd.s32 4294967200, %v1187_v39 }
  0xac   : > { %v392_v54 = vrot.slane %v310_v45, %v391_v28  ;;  %v277_v55 = vpop.xlane.xlu0 %276 }
  0xad   : > { %v387_v57 = vsel %vm386_vm4, %v385_v47, %v380_v46  ;;  %v311_v58 = vmul.f32 0.00390625, %v277_v55  ;;  %v280_v59 = vpop.xlane.xlu1 %279  ;;  %v433_v46 = vsub.s32 %v430_v16, %v1189_v44  ;;  %v444_v47 = vadd.s32 4294967192, %v1187_v39 }
  0xae   : > { %v312_v60 = vmul.f32 0.00390625, %v280_v59  ;;  %v394_v3 = vsel %vm393_vm5, %v392_v54, %v387_v57  ;;  %v440_v38 = vsub.s32 %v437_v35, %v1189_v44  ;;  %v451_v57 = vadd.s32 4294967184, %v1187_v39 }
  0xaf   : > { %v399_v61 = vrot.slane %v311_v58, %v398_v48 }
  0xb0   : > { %v406_v7 = vrot.slane %v312_v60, %v405_v56  ;;  %v283_v10 = vpop.xlane.xlu0 %282  ;;  %v454_v16 = vsub.s32 %v451_v57, %v1189_v44 }
  0xb1   : > { %v401_v17 = vsel %vm400_vm6, %v399_v61, %v394_v3  ;;  %v313_v22 = vmul.f32 0.00390625, %v283_v10  ;;  %v286_v23 = vpop.xlane.xlu1 %285  ;;  %v447_v61 = vsub.s32 %v444_v47, %v1189_v44 }
  0xb2   : > { %v314_v28 = vmul.f32 0.00390625, %v286_v23  ;;  %v408_v36 = vsel %vm407_vm7, %v406_v7, %v401_v17 }
  0xb3   : > { %v413_v29 = vrot.slane %v313_v22, %v412_v62  ;;  %v458_v62 = vadd.s32 4294967176, %v1187_v39 }
  0xb4   : > { %v420_v37 = vrot.slane %v314_v28, %v419_v11  ;;  %v289_v45 = vpop.xlane.xlu0 %288 }
  0xb5   : > { %v415_v48 = vsel %vm414_vm8, %v413_v29, %v408_v36  ;;  %v315_v53 = vmul.f32 0.00390625, %v289_v45  ;;  %v292_v54 = vpop.xlane.xlu1 %291  ;;  %v461_v28 = vsub.s32 %v458_v62, %v1189_v44 }
  0xb6   : > { %v316_v55 = vmul.f32 0.00390625, %v292_v54  ;;  %v422_v58 = vsel %vm421_vm9, %v420_v37, %v415_v48  ;;  %v539_v48 = vld [vmem:[%s1314_s3 + $0x10] sm:$0xff] }
  0xb7   : > { %v427_v56 = vrot.slane %v315_v53, %v426_v34  ;;  %v540_v53 = vld [vmem:[%s1314_s3 + $0x18] sm:$0xff] }
  0xb8   : > { %v434_v59 = vrot.slane %v316_v55, %v433_v46  ;;  %v295_v60 = vpop.xlane.xlu0 %294  ;;  %v919_v54 = vpack.c.bf16 %v540_v53, %v539_v48  ;;  %v337_v55 = vld [vmem:[%s1313_s2] sm:$0x1] }
  0xb9   : > { %v429_v63 = vsel %vm428_vm10, %v427_v56, %v422_v58  ;;  %v317_v3 = vmul.f32 0.00390625, %v295_v60  ;;  %v298_v7 = vpop.xlane.xlu1 %297 }
  0xba   : > { %v318_v10 = vmul.f32 0.00390625, %v298_v7  ;;  %v436_v17 = vsel %vm435_vm11, %v434_v59, %v429_v63  ;;  %920 = vmatpush3.bf16.msra.mxu1 %v919_v54  ;;  %v541_v59 = vld [vmem:[%s1315_s4] sm:$0x1] }
  0xbb   : > { %v441_v11 = vrot.slane %v317_v3, %v440_v38 }
  0xbc   : > { %v448_v22 = vrot.slane %v318_v10, %v447_v61  ;;  %v301_v23 = vpop.xlane.xlu0 %300  ;;  %v624_v10 = vsub.s32 0, %v1189_v44 }
  0xbd   : > { %v443_v29 = vsel %vm442_vm12, %v441_v11, %v436_v17  ;;  %v319_v34 = vmul.f32 0.00390625, %v301_v23  ;;  %v304_v35 = vpop.xlane.xlu1 %303 }
  0xbe   : > { %v320_v36 = vmul.f32 0.00390625, %v304_v35  ;;  %v450_v45 = vsel %vm449_vm13, %v448_v22, %v443_v29 }
  0xbf   : > { %v455_v39 = vrot.slane %v319_v34, %v454_v16 }
  0xc0   : > { %v462_v37 = vrot.slane %v320_v36, %v461_v28 }
  0xc1   : > { %v457_v46 = vsel %vm456_vm14, %v455_v39, %v450_v45 }
  0xc2   : > { %v464_v47 = vsel %vm463_vm15, %v462_v37, %v457_v46 }
  0xc3   : > { %878 = vmatmul.mubr.f32.vlgmr.msra.gmra.mrb[0].mxu0 %v464_v47 }
 0x196   : > { %v532_v56 = vpop.f32.mrb[0].mxu0 }
 0x197   : > { %v533_v38 = vadd.f32 %v532_v56, %v337_v55  ;;  %v879_v57 = vpop.f32.mrb[1].mxu0 }
 0x199   : > { %v536_v58 = vmax.f32 %v533_v38, 0.0 }
 0x19b   : > { %889 = vmatmul.mubr.msk.f32.vlgmr.msra.gmra.mrb[0].mxu1 %vm542_vm0, %v536_v58 }
 0x26e   : > { %v612_v60 = vpop.f32.mrb[0].mxu1 }
 0x26f   : > { %v613_v61 = vadd.f32 %v612_v60, %v541_v59  ;;  %v890_v62 = vpop.f32.mrb[1].mxu1 }
 0x271   : > { %v818_v63 = vmul.f32 -1.442695, %v613_v61 }
 0x273   : > { %932 = vpow2.f32 %v818_v63 }
 0x27d   : > { %v933_v3 = vpop.eup %932 }
 0x27e   : > { %v619_v7 = vadd.f32 1.0, %v933_v3 }
 0x280   : > { %934 = vrcp.f32 %v619_v7 }
 0x28a   : > { %v935_v11 = vpop.eup %934 }
 0x28b   : > { %v625_v16 = vrot.slane %v935_v11, %v624_v10 }
 0x28d   : > { %631 = vbcast.lane.b32.xlu1 %v625_v16, 264  ;;  %627 = vbcast.lane.b32.xlu0 %v625_v16, 256 }
 0x291   : > { %635 = vbcast.lane.b32.xlu1 %v625_v16, 272  ;;  %643 = vbcast.lane.b32.xlu0 %v625_v16, 288 }
 0x295   : > { %639 = vbcast.lane.b32.xlu1 %v625_v16, 280  ;;  %651 = vbcast.lane.b32.xlu0 %v625_v16, 304 }
 0x299   : > { %647 = vbcast.lane.b32.xlu1 %v625_v16, 296  ;;  %659 = vbcast.lane.b32.xlu0 %v625_v16, 320 }
 0x29d   : > { %655 = vbcast.lane.b32.xlu1 %v625_v16, 312  ;;  %667 = vbcast.lane.b32.xlu0 %v625_v16, 336 }
 0x2a1   : > { %663 = vbcast.lane.b32.xlu1 %v625_v16, 328  ;;  %675 = vbcast.lane.b32.xlu0 %v625_v16, 352 }
 0x2a5   : > { %671 = vbcast.lane.b32.xlu1 %v625_v16, 344  ;;  %683 = vbcast.lane.b32.xlu0 %v625_v16, 368 }
 0x2a9   : > { %679 = vbcast.lane.b32.xlu1 %v625_v16, 360 }
 0x2ad   : > { %687 = vbcast.lane.b32.xlu1 %v625_v16, 376 }
 0x2ff   : > { %v632_v44 = vpop.permute.xlu1 %631  ;;  %v628_v17 = vpop.permute.xlu0 %627 }
 0x300   : > { %v691_v22 = vmul.f32 %v632_v44, %v1010_v5  ;;  %v692_v23 = vmul.f32 %v632_v44, %v1013_v6  ;;  %v689_v28 = vmul.f32 %v628_v17, %v996_v0  ;;  %v690_v29 = vmul.f32 %v628_v17, %v999_v1 }
 0x302   : > { %723 = vst [vmem:[%s1242_s26 + $0x10] sm:$0xff] %v691_v22  ;;  %724 = vst [vmem:[%s1242_s26 + $0x18] sm:$0xff] %v692_v23 }
 0x303   : > { %721 = vst [vmem:[%s1242_s26] sm:$0xff] %v689_v28  ;;  %722 = vst [vmem:[%s1242_s26 + $0x8] sm:$0xff] %v690_v29  ;;  %v636_v34 = vpop.permute.xlu1 %635  ;;  %v644_v35 = vpop.permute.xlu0 %643 }
 0x304   : > { %v693_v36 = vmul.f32 %v636_v34, %v1002_v2  ;;  %v694_v5 = vmul.f32 %v636_v34, %v1007_v4  ;;  %v697_v6 = vmul.f32 %v644_v35, %v1028_v12  ;;  %v698_v0 = vmul.f32 %v644_v35, %v1031_v13 }
 0x306   : > { %725 = vst [vmem:[%s1242_s26 + $0x20] sm:$0xff] %v693_v36  ;;  %726 = vst [vmem:[%s1242_s26 + $0x28] sm:$0xff] %v694_v5 }
 0x307   : > { %729 = vst [vmem:[%s1242_s26 + $0x40] sm:$0xff] %v697_v6  ;;  %730 = vst [vmem:[%s1242_s26 + $0x48] sm:$0xff] %v698_v0  ;;  %v640_v1 = vpop.permute.xlu1 %639  ;;  %v652_v39 = vpop.permute.xlu0 %651 }
 0x308   : > { %v695_v37 = vmul.f32 %v640_v1, %v1018_v8  ;;  %v696_v2 = vmul.f32 %v640_v1, %v1021_v9  ;;  %v701_v4 = vmul.f32 %v652_v39, %v1044_v18  ;;  %v702_v12 = vmul.f32 %v652_v39, %v1047_v19 }
 0x30a   : > { %727 = vst [vmem:[%s1242_s26 + $0x30] sm:$0xff] %v695_v37  ;;  %728 = vst [vmem:[%s1242_s26 + $0x38] sm:$0xff] %v696_v2 }
 0x30b   : > { %733 = vst [vmem:[%s1242_s26 + $0x60] sm:$0xff] %v701_v4  ;;  %734 = vst [vmem:[%s1242_s26 + $0x68] sm:$0xff] %v702_v12  ;;  %v648_v13 = vpop.permute.xlu1 %647  ;;  %v660_v45 = vpop.permute.xlu0 %659 }
 0x30c   : > { %v699_v46 = vmul.f32 %v648_v13, %v1034_v14  ;;  %v700_v8 = vmul.f32 %v648_v13, %v1037_v15  ;;  %v705_v9 = vmul.f32 %v660_v45, %v1060_v24  ;;  %v706_v18 = vmul.f32 %v660_v45, %v1063_v25 }
 0x30e   : > { %731 = vst [vmem:[%s1242_s26 + $0x50] sm:$0xff] %v699_v46  ;;  %732 = vst [vmem:[%s1242_s26 + $0x58] sm:$0xff] %v700_v8 }
 0x30f   : > { %737 = vst [vmem:[%s1242_s26 + $0x80] sm:$0xff] %v705_v9  ;;  %738 = vst [vmem:[%s1242_s26 + $0x88] sm:$0xff] %v706_v18  ;;  %v656_v19 = vpop.permute.xlu1 %655  ;;  %v668_v47 = vpop.permute.xlu0 %667 }
 0x310   : > { %v703_v48 = vmul.f32 %v656_v19, %v1050_v20  ;;  %v704_v14 = vmul.f32 %v656_v19, %v1053_v21  ;;  %v709_v15 = vmul.f32 %v668_v47, %v1076_v30  ;;  %v710_v24 = vmul.f32 %v668_v47, %v1079_v31 }
 0x312   : > { %735 = vst [vmem:[%s1242_s26 + $0x70] sm:$0xff] %v703_v48  ;;  %736 = vst [vmem:[%s1242_s26 + $0x78] sm:$0xff] %v704_v14 }
 0x313   : > { %741 = vst [vmem:[%s1242_s26 + $0xa0] sm:$0xff] %v709_v15  ;;  %742 = vst [vmem:[%s1242_s26 + $0xa8] sm:$0xff] %v710_v24  ;;  %v664_v25 = vpop.permute.xlu1 %663  ;;  %v676_v53 = vpop.permute.xlu0 %675 }
 0x314   : > { %v707_v54 = vmul.f32 %v664_v25, %v1066_v26  ;;  %v708_v20 = vmul.f32 %v664_v25, %v1069_v27  ;;  %v713_v21 = vmul.f32 %v676_v53, %v1099_v40  ;;  %v714_v30 = vmul.f32 %v676_v53, %v1102_v41 }
 0x316   : > { %739 = vst [vmem:[%s1242_s26 + $0x90] sm:$0xff] %v707_v54  ;;  %740 = vst [vmem:[%s1242_s26 + $0x98] sm:$0xff] %v708_v20 }
 0x317   : > { %745 = vst [vmem:[%s1242_s26 + $0xc0] sm:$0xff] %v713_v21  ;;  %746 = vst [vmem:[%s1242_s26 + $0xc8] sm:$0xff] %v714_v30  ;;  %v672_v31 = vpop.permute.xlu1 %671  ;;  %v684_v55 = vpop.permute.xlu0 %683 }
 0x318   : > { %v711_v56 = vmul.f32 %v672_v31, %v1082_v32  ;;  %v712_v26 = vmul.f32 %v672_v31, %v1085_v33  ;;  %v717_v27 = vmul.f32 %v684_v55, %v1123_v49  ;;  %v718_v40 = vmul.f32 %v684_v55, %v1126_v50 }
 0x31a   : > { %743 = vst [vmem:[%s1242_s26 + $0xb0] sm:$0xff] %v711_v56  ;;  %744 = vst [vmem:[%s1242_s26 + $0xb8] sm:$0xff] %v712_v26 }
 0x31b   : > { %749 = vst [vmem:[%s1242_s26 + $0xe0] sm:$0xff] %v717_v27  ;;  %750 = vst [vmem:[%s1242_s26 + $0xe8] sm:$0xff] %v718_v40  ;;  %v680_v41 = vpop.permute.xlu1 %679 }
 0x31c   : > { %v715_v38 = vmul.f32 %v680_v41, %v1105_v42  ;;  %v716_v57 = vmul.f32 %v680_v41, %v1108_v43 }
 0x31e   : > { %747 = vst [vmem:[%s1242_s26 + $0xd0] sm:$0xff] %v715_v38  ;;  %748 = vst [vmem:[%s1242_s26 + $0xd8] sm:$0xff] %v716_v57 }
 0x31f   : > { %v688_v32 = vpop.permute.xlu1 %687 }
 0x320   : > { %v719_v58 = vmul.f32 %v688_v32, %v1129_v51  ;;  %v720_v33 = vmul.f32 %v688_v32, %v1132_v52 }
 0x322   : > { %751 = vst [vmem:[%s1242_s26 + $0xf0] sm:$0xff] %v719_v58  ;;  %752 = vst [vmem:[%s1242_s26 + $0xf8] sm:$0xff] %v720_v33 }
 0x323 PF: > { %s15_s18 = sadd.s32 1, %s942_s18  }
 0x324   : > { %p12_p4 = scmp.ge.s32.totalorder %s15_s18, 4  }
 0x326   :  { %14 = sbr.rel (!%p12_p4) target bundleno = 1 (0x1), region = 70 }

</bundles_post_ra>
